<compile_context>
chip_gen: v7x
topology: tpu7x:2x2x1
jax: 0.10.0
libtpu: 0.0.40
codegen_flags: <defaults>
</compile_context>

<pallas_src>
import functools

import jax
import jax.numpy as jnp
from jax.experimental import pallas as pl
from jax.experimental.pallas import tpu as pltpu


def _round_up(a: int, b: int) -> int:
    return (a + b - 1) // b * b


# ----------------------------------------------------------------------------
# VMEM budgeting / tile selection
# ----------------------------------------------------------------------------

def _vmem_capacity_bytes() -> int:
    try:
        cap = int(pltpu.get_tpu_info().vmem_capacity_bytes)
        if cap > 0:
            return cap
    except Exception:
        pass
    return 64 << 20  # conservative default (v7x per-TensorCore VMEM)


def _vmem_budget() -> int:
    # Leave headroom for Mosaic internal scratch, semaphores, etc.
    return int(_vmem_capacity_bytes() * 0.85) - (2 << 20)


def _working_set_bytes(tm: int, th: int, dim_p: int,
                       x_isz: int, w_isz: int) -> int:
    """Estimated VMEM working set for one grid step (double-buffered specs +
    accumulator + in-kernel f32 intermediates)."""
    return (2 * tm * dim_p * x_isz            # x tiles
            + 2 * dim_p * (2 * th) * w_isz    # packed [w1|w3] tiles
            + 2 * th * dim_p * w_isz          # w2 tiles
            + 2 * tm * dim_p * x_isz          # output tiles
            + tm * dim_p * 4                  # f32 accumulator
            + tm * (2 * th) * 4               # a|b f32 intermediate
            + tm * th * 4                     # gated f32
            + tm * th * w_isz                 # gated cast for MXU
            + tm * dim_p * 4)                 # down-proj partial product


def _tm_candidates(m: int):
    if m <= 256:
        return [_round_up(max(m, 8), 8)]     # one tight tile, no padding waste
    # >=2 M tiles when possible so v7x's two TensorCores both get work
    # (the M axis is the "parallel" grid dim).
    half = max(128, _round_up(-(-m // 2), 128))
    return sorted({min(t, half) for t in (768, 512, 384, 256, 128)},
                  reverse=True)


def _select_tiles(m: int, dim: int, hidden: int, x_isz: int, w_isz: int):
    """Pick (tm, th_eff).  Prefer resident weights (weights DMA'd once), then
    the largest M tile (streaming intensity ~ tm FLOPs/byte)."""
    dim_p = _round_up(dim, 128)
    hid_p = _round_up(hidden, 128)
    budget = _vmem_budget()
    tm_cands = _tm_candidates(m)

    # 1) Resident-weights fast path: th_eff == full padded hidden.
    for tm in tm_cands:
        if _working_set_bytes(tm, hid_p, dim_p, x_isz, w_isz) <= budget:
            return tm, hid_p
    # 2) Stream the hidden dim; maximize tm first (total weight traffic is
    #    independent of th, so trading th for tm is free).
    for tm in tm_cands:
        for th in (1024, 512, 256, 128):
            if th >= hid_p:
                continue
            if _working_set_bytes(tm, th, dim_p, x_isz, w_isz) <= budget:
                return tm, th
    # TODO(synk): add a dim-tiling grid axis for very large dim on 64 MiB VMEM.
    return tm_cands[-1], 128


def _select_tm(m: int, th_eff: int, dim_p: int, x_isz: int, w_isz: int) -> int:
    budget = _vmem_budget()
    cands = _tm_candidates(m)
    for tm in cands:
        if _working_set_bytes(tm, th_eff, dim_p, x_isz, w_isz) <= budget:
            return tm
    return cands[-1]


# ----------------------------------------------------------------------------
# Weight preparation (run ONCE at init, outside the jitted forward)
# ----------------------------------------------------------------------------

def swiglu_prepare(w1_t, w3_t, w2_t, *, m_hint: int = 4096):
    """Pad + pack weights once.

    w1_t, w3_t : (dim, hidden)   nn.Linear(dim, hidden).weight pre-transposed
    w2_t       : (hidden, dim)   nn.Linear(hidden, dim).weight pre-transposed

    Returns (w13_packed, w2_padded, th_eff):
      w13_packed : (dim_p, nh * 2 * th_eff), block h = [w1_h | w3_h]
      w2_padded  : (hid_p, dim_p)
    """
    dim, hidden = w1_t.shape
    w_isz = jnp.dtype(w1_t.dtype).itemsize
    # Use f32 activation itemsize for a conservative VMEM estimate.
    _, th_eff = _select_tiles(m_hint, dim, hidden, 4, w_isz)

    dim_p = _round_up(dim, 128)
    hid_p = _round_up(hidden, th_eff)
    nh = hid_p // th_eff

    w1_p = jnp.pad(w1_t, ((0, dim_p - dim), (0, hid_p - hidden)))
    w3_p = jnp.pad(w3_t, ((0, dim_p - dim), (0, hid_p - hidden)))
    # Interleave so grid step h sees one lane-contiguous (dim_p, 2*th) tile.
    w13 = jnp.concatenate(
        [w1_p.reshape(dim_p, nh, th_eff), w3_p.reshape(dim_p, nh, th_eff)],
        axis=-1).reshape(dim_p, nh * 2 * th_eff)
    w2_p = jnp.pad(w2_t, ((0, hid_p - hidden), (0, dim_p - dim)))
    return w13, w2_p, th_eff


# ----------------------------------------------------------------------------
# Kernels
# ----------------------------------------------------------------------------

def _swiglu_block(x, w13, w2):
    """x:(tm,Dp), w13:(Dp,2tH)=[w1|w3], w2:(tH,Dp) -> f32 (tm,Dp) partial."""
    th = w13.shape[-1] // 2
    ab = jnp.dot(x, w13, preferred_element_type=jnp.float32)   # one MXU pass
    a, b = ab[:, :th], ab[:, th:]
    g = (a * jax.nn.sigmoid(a)) * b        # silu(a)*b : sigmoid -> EUP
    # dropout: identity (eval mode)
    return jnp.dot(g.astype(w2.dtype), w2, preferred_element_type=jnp.float32)


def _swiglu_kernel_single(x_ref, w13_ref, w2_ref, o_ref):
    # Single hidden step: resident weights, write output directly.
    o_ref[...] = _swiglu_block(x_ref[...], w13_ref[...],
                               w2_ref[...]).astype(o_ref.dtype)


def _swiglu_kernel_accout(x_ref, w13_ref, w2_ref, o_ref):
    # f32 output: accumulate directly into the VMEM-resident output block.
    h = pl.program_id(1)
    partial = _swiglu_block(x_ref[...], w13_ref[...], w2_ref[...])

    @pl.when(h == 0)
    def _():
        o_ref[...] = partial

    @pl.when(h != 0)
    def _():
        o_ref[...] += partial


def _swiglu_kernel_acc(x_ref, w13_ref, w2_ref, o_ref, acc_ref):
    # General path: f32 scratch accumulator across the hidden reduction.
    h = pl.program_id(1)
    partial = _swiglu_block(x_ref[...], w13_ref[...], w2_ref[...])

    @pl.when(h == 0)
    def _():
        acc_ref[...] = partial

    @pl.when(h != 0)
    def _():
        acc_ref[...] += partial

    @pl.when(h == pl.num_programs(1) - 1)
    def _():
        o_ref[...] = acc_ref[...].astype(o_ref.dtype)


# ----------------------------------------------------------------------------
# Forward
# ----------------------------------------------------------------------------

@functools.partial(jax.jit, static_argnames=("th_eff",))
def swiglu_pallas(x, w13_packed, w2_padded, *, th_eff):
    """Fused SwiGLU forward.  x: (..., dim); weights from swiglu_prepare()."""
    orig_shape = x.shape
    dim = orig_shape[-1]
    dim_p = w2_padded.shape[1]
    hid_p = w2_padded.shape[0]
    nh = hid_p // th_eff

    x2 = x.reshape(-1, dim)
    m = x2.shape[0]

    x_isz = jnp.dtype(x.dtype).itemsize
    w_isz = jnp.dtype(w2_padded.dtype).itemsize

    tm = _select_tm(m, th_eff, dim_p, x_isz, w_isz)
    m_p = _round_up(m, tm)
    n_mtiles = m_p // tm

    x_p = jnp.pad(x2, ((0, m_p - m), (0, dim_p - dim)))

    # Kernel variant: no scratch when there is a single hidden step; f32
    # outputs accumulate directly into the output block (saves one full
    # (tm, dim_p) f32 store+read per M tile and frees VMEM).
    if nh == 1:
        kernel, scratch = _swiglu_kernel_single, []
    elif jnp.dtype(x.dtype) == jnp.float32:
        kernel, scratch = _swiglu_kernel_accout, []
    else:
        kernel, scratch = (_swiglu_kernel_acc,
                           [pltpu.VMEM((tm, dim_p), jnp.float32)])

    ws = _working_set_bytes(tm, th_eff, dim_p, x_isz, w_isz)
    vmem_cap = _vmem_capacity_bytes()
    vmem_limit = min(max(int(ws * 1.4) + (4 << 20), 32 << 20),
                     int(vmem_cap * 0.9))

    # Weights are re-streamed once per M tile only when the hidden dim is
    # tiled; in the resident path their block index never changes so they are
    # DMA'd exactly once.
    weight_passes = 1 if nh == 1 else n_mtiles
    cost = pl.CostEstimate(
        flops=6 * m_p * dim_p * hid_p,
        transcendentals=m_p * hid_p,
        bytes_accessed=(2 * m_p * dim_p * x_isz
                        + weight_passes * 3 * dim_p * hid_p * w_isz))

    out = pl.pallas_call(
        kernel,
        out_shape=jax.ShapeDtypeStruct((m_p, dim_p), x.dtype),
        grid_spec=pltpu.PrefetchScalarGridSpec(
            num_scalar_prefetch=0,
            grid=(n_mtiles, nh),                       # reduction axis last
            in_specs=[
                pl.BlockSpec((tm, dim_p), lambda i, h: (i, 0)),          # x
                pl.BlockSpec((dim_p, 2 * th_eff), lambda i, h: (0, h)),  # w1|w3
                pl.BlockSpec((th_eff, dim_p), lambda i, h: (h, 0)),      # w2
            ],
            out_specs=pl.BlockSpec((tm, dim_p), lambda i, h: (i, 0)),
            scratch_shapes=scratch,
        ),
        compiler_params=pltpu.CompilerParams(
            dimension_semantics=("parallel", "arbitrary"),
            vmem_limit_bytes=vmem_limit),
        cost_estimate=cost,
    )(x_p, w13_packed, w2_padded)

    return out[:m, :dim].reshape(orig_shape)


def _reference(x, w1_t, w3_t, w2_t):
    a = x @ w1_t
    b = x @ w3_t
    h = (a * jax.nn.sigmoid(a)) * b
    return h @ w2_t


if __name__ == "__main__":
    # Small shapes consistent with the module: dim=32, hidden=64,
    # input x: (batch=2, seq=8, dim=32).
    batch, seq, dim, hidden = 2, 8, 32, 64

    key = jax.random.PRNGKey(0)
    kx, k1, k2, k3 = jax.random.split(key, 4)

    x = jax.random.normal(kx, (batch, seq, dim), dtype=jnp.float32)

    # Deterministic params (nn.Linear(..., bias=False)), stored pre-transposed
    # as (in_features, out_features).
    w1_t = jax.random.normal(k1, (dim, hidden), dtype=jnp.float32) * (dim ** -0.5)
    w3_t = jax.random.normal(k3, (dim, hidden), dtype=jnp.float32) * (dim ** -0.5)
    w2_t = jax.random.normal(k2, (hidden, dim), dtype=jnp.float32) * (hidden ** -0.5)

    # Pad/pack weights once (outside the jitted forward).
    w13_p, w2_p, th_eff = swiglu_prepare(w1_t, w3_t, w2_t)

    out = swiglu_pallas(x, w13_p, w2_p, th_eff=th_eff)
    out = jax.block_until_ready(out)

    ref = _reference(x, w1_t, w3_t, w2_t)
    assert out.shape == x.shape and out.dtype == x.dtype
    assert jnp.allclose(out, ref, atol=1e-4, rtol=1e-4), "mismatch vs reference"

    # bf16 smoke test: native-dtype MXU inputs with f32 accumulation.
    w13_b, w2_b, th_b = swiglu_prepare(w1_t.astype(jnp.bfloat16),
                                       w3_t.astype(jnp.bfloat16),
                                       w2_t.astype(jnp.bfloat16))
    out_b = swiglu_pallas(x.astype(jnp.bfloat16), w13_b, w2_b, th_eff=th_b)
    out_b = jax.block_until_ready(out_b)
    assert out_b.shape == x.shape and out_b.dtype == jnp.bfloat16
    assert bool(jnp.all(jnp.isfinite(out_b.astype(jnp.float32))))

    print("KERNEL_OK")
</pallas_src>

<mosaic_0001>
module attributes {stable_mosaic.version = 11 : i64} {
  func.func @_swiglu_kernel_single(%arg0: i32, %arg1: i32, %arg2: memref<16x128xf32, #tpu.memory_space<vmem>>, %arg3: memref<128x256xf32, #tpu.memory_space<vmem>>, %arg4: memref<128x128xf32, #tpu.memory_space<vmem>>, %arg5: memref<16x128xf32, #tpu.memory_space<vmem>>) attributes {dimension_semantics = [#tpu.dimension_semantics<parallel>, #tpu.dimension_semantics<arbitrary>], iteration_bounds = array<i64: 1, 1>, scalar_prefetch = 0 : i64, scratch_operands = 0 : i64, tpu.core_type = #tpu.core_type<tc>, window_params = [{transform_indices = @transform_0, window_bounds = array<i64: 16, 128>}, {transform_indices = @transform_1, window_bounds = array<i64: 128, 256>}, {transform_indices = @transform_2, window_bounds = array<i64: 128, 128>}, {transform_indices = @transform_3, window_bounds = array<i64: 16, 128>}]} {
    %c0 = arith.constant 0 : index
    %c0_0 = arith.constant 0 : index
    %0 = vector.load %arg2[%c0, %c0_0] : memref<16x128xf32, #tpu.memory_space<vmem>>, vector<16x128xf32>
    %c0_1 = arith.constant 0 : index
    %c0_2 = arith.constant 0 : index
    %1 = vector.load %arg3[%c0_1, %c0_2] : memref<128x256xf32, #tpu.memory_space<vmem>>, vector<128x256xf32>
    %c0_3 = arith.constant 0 : index
    %c0_4 = arith.constant 0 : index
    %2 = vector.load %arg4[%c0_3, %c0_4] : memref<128x128xf32, #tpu.memory_space<vmem>>, vector<128x128xf32>
    %cst = arith.constant dense<0.000000e+00> : vector<16x256xf32>
    %3 = tpu.matmul %0, %1, %cst {dimension_numbers = #tpu.dot_dimension_numbers<[1], [0], [0], [1], [0, 0, 1, 1], [], []>} : vector<16x128xf32>, vector<128x256xf32>, vector<16x256xf32> -> vector<16x256xf32>
    %4 = vector.extract_strided_slice %3 {offsets = [0, 0], sizes = [16, 128], strides = [1, 1]} : vector<16x256xf32> to vector<16x128xf32>
    %5 = vector.extract_strided_slice %3 {offsets = [0, 128], sizes = [16, 128], strides = [1, 1]} : vector<16x256xf32> to vector<16x128xf32>
    %6 = arith.negf %4 : vector<16x128xf32>
    %7 = math.exp %6 : vector<16x128xf32>
    %cst_5 = arith.constant 1.000000e+00 : f32
    %8 = vector.broadcast %cst_5 : f32 to vector<16x128xf32>
    %9 = arith.addf %8, %7 : vector<16x128xf32>
    %10 = arith.divf %8, %9 : vector<16x128xf32>
    %11 = arith.mulf %4, %10 : vector<16x128xf32>
    %12 = arith.mulf %11, %5 : vector<16x128xf32>
    %cst_6 = arith.constant dense<0.000000e+00> : vector<16x128xf32>
    %13 = tpu.matmul %12, %2, %cst_6 {dimension_numbers = #tpu.dot_dimension_numbers<[1], [0], [0], [1], [0, 0, 1, 1], [], []>} : vector<16x128xf32>, vector<128x128xf32>, vector<16x128xf32> -> vector<16x128xf32>
    %c0_7 = arith.constant 0 : index
    %c0_8 = arith.constant 0 : index
    %14 = vector.load %arg5[%c0_7, %c0_8] : memref<16x128xf32, #tpu.memory_space<vmem>>, vector<16x128xf32>
    tpu.vector_store %arg5[%c0_7, %c0_8], %13 {strides = array<i32>} : memref<16x128xf32, #tpu.memory_space<vmem>>, vector<16x128xf32>,
    return
  }
  func.func @transform_0(%arg0: i32, %arg1: i32) -> (i32, i32) {
    %c0_i32 = arith.constant 0 : i32
    %c0_i32_0 = arith.constant 0 : i32
    return %arg0, %c0_i32 : i32, i32
  }
  func.func @transform_1(%arg0: i32, %arg1: i32) -> (i32, i32) {
    %c0_i32 = arith.constant 0 : i32
    %c0_i32_0 = arith.constant 0 : i32
    return %c0_i32, %arg1 : i32, i32
  }
  func.func @transform_2(%arg0: i32, %arg1: i32) -> (i32, i32) {
    %c0_i32 = arith.constant 0 : i32
    %c0_i32_0 = arith.constant 0 : i32
    return %arg1, %c0_i32 : i32, i32
  }
  func.func @transform_3(%arg0: i32, %arg1: i32) -> (i32, i32) {
    %c0_i32 = arith.constant 0 : i32
    %c0_i32_0 = arith.constant 0 : i32
    return %arg0, %c0_i32 : i32, i32
  }
}

</mosaic_0001>

<bundles_post_ra>
// kernel: swiglu_pallas.1
= control target key start
LH: loop header
LB: loop body
LE: loop exit
PB: predicated region body
PF: predicated region fallthrough
CT: control target
= control target key end

     0   :  { %8 = vsyncpa [#allocation3], 0  ;;  %s515_s0 = inlined_call_operand.vmem [shape: f32[16,128], index: 0, kind: input, shape index: {}]   ;;  %s516_s1 = inlined_call_operand.hbm [shape: f32[128,256], index: 1, kind: input, shape index: {}]   ;;  %s517_s2 = inlined_call_operand.hbm [shape: f32[128,128], index: 2, kind: input, shape index: {}]   ;;  %s518_s3 = inlined_call_operand.vmem [shape: f32[16,128], index: 3, kind: output, shape index: {}]  }
   0x1   :  { %9 = vsyncpa [#allocation5], 0  ;;  %s450_s12 = smov [#allocation2]   ;;  %s402_s16 = scalar_lea.hbm %s516_s1, 4096 }
   0x2   :  { %s17_s13 = sshll.u32 %s450_s12, 4  ;;  %p403_p0 = scmp.ne.s32.totalorder %s516_s1, %s402_s16  ;;  %s18_s13 = int_to_ptr.vmem [resolvable:$true] %s17_s13 }
   0x3   :  { %p406_p1 = scmp.lt.u32.totalorder %s402_s16, %s516_s1 }
   0x5   :  { %p408_p2 = pnand %p406_p1, %p403_p0 }
   0x7   :  { %411 = shalt.err (!%p408_p2)
}
   0x8   :  { %s412_s21 = scalar_lea.vmem %s18_s13, 4096  ;;  %p417_p4 = scmp.lt.s32.totalorder %s18_s13, %s18_s13 }
   0x9   :  { %p413_p3 = scmp.ne.s32.totalorder %s18_s13, %s412_s21  ;;  %p418_p5 = scmp.lt.s32.totalorder %s412_s21, %s412_s21 }
   0xb   :  { %p419_p6 = por %p418_p5, %p417_p4 }
   0xd   :  { %p420_p7 = pnand %p419_p6, %p413_p3 }
   0xf   :  { %423 = shalt.err (!%p420_p7)
}
  0x10   :  { %s451_s22 = smov 256   ;;  %s452_s23 = smov 16  }
  0x11   :  { %23 = dma.hbm_to_vmem [thread:$0]  %s516_s1, 4096, %s18_s13, [#allocation3], %s451_s22, %s451_s22, %s452_s23  }
  0x12   :  { %s453_s26 = smov [#allocation4]   ;;  %s424_s30 = scalar_lea.hbm %s517_s2, 2048 }
  0x13   :  { %s29_s27 = sshll.u32 %s453_s26, 4  ;;  %p425_p8 = scmp.ne.s32.totalorder %s517_s2, %s424_s30  ;;  %s30_s27 = int_to_ptr.vmem [resolvable:$true] %s29_s27 }
  0x14   :  { %p428_p9 = scmp.lt.u32.totalorder %s424_s30, %s517_s2 }
  0x16   :  { %p430_p10 = pnand %p428_p9, %p425_p8 }
  0x18   :  { %433 = shalt.err (!%p430_p10)
}
  0x19   :  { %s434_s8 = scalar_lea.vmem %s30_s27, 2048  ;;  %p439_p12 = scmp.lt.s32.totalorder %s30_s27, %s30_s27 }
  0x1a   :  { %p435_p11 = scmp.ne.s32.totalorder %s30_s27, %s434_s8  ;;  %p440_p13 = scmp.lt.s32.totalorder %s434_s8, %s434_s8 }
  0x1c   :  { %p441_p0 = por %p440_p13, %p439_p12 }
  0x1e   :  { %p442_p1 = pnand %p441_p0, %p435_p11 }
  0x20   :  { %445 = shalt.err (!%p442_p1)
}
  0x21   :  { %s454_s1 = smov 128   ;;  %s455_s9 = smov 8  }
  0x22   :  { %35 = dma.hbm_to_vmem [thread:$0]  %s517_s2, 2048, %s30_s27, [#allocation5], %s454_s1, %s454_s1, %s455_s9  }
  0x23   :  { %446 = dma.done.wait [#allocation3], 4096  }
  0x24   :  { %447 = vsyncadd [#allocation3], 4294963200 }
  0x25   :  { %448 = dma.done.wait [#allocation5], 2048  }
  0x26   :  { %449 = vsyncadd [#allocation5], 4294965248  ;;  %v456_v0 = vmov 0.0   ;;  %v45_v1 = vld [vmem:[#allocation2 + $0x8] sm:$0xff]  ;;  %v47_v2 = vld [vmem:[#allocation2 + $0x18] sm:$0xff] }
  0x27   :  { %156 = vmatprep.mubr.f32.mxu0 %v456_v0  ;;  %v44_v3 = vld [vmem:[#allocation2] sm:$0xff]  ;;  %v323_v4 = vpack.c.bf16 %v47_v2, %v45_v1  ;;  %v46_v5 = vld [vmem:[#allocation2 + $0x10] sm:$0xff]  ;;  %v49_v6 = vld [vmem:[#allocation2 + $0x28] sm:$0xff] }
  0x28   :  { %v51_v7 = vld [vmem:[#allocation2 + $0x38] sm:$0xff]  ;;  %v325_v8 = vpack.c.bf16 %v46_v5, %v44_v3  ;;  %v48_v10 = vld [vmem:[#allocation2 + $0x20] sm:$0xff]  ;;  %v50_v11 = vld [vmem:[#allocation2 + $0x30] sm:$0xff] }
  0x29   :  { %v327_v9 = vpack.c.bf16 %v51_v7, %v49_v6  ;;  %v53_v12 = vld [vmem:[#allocation2 + $0x48] sm:$0xff]  ;;  %324 = vmatprep.subr.bf16.mxu0 %v323_v4  ;;  %v55_v13 = vld [vmem:[#allocation2 + $0x58] sm:$0xff]  ;;  %v329_v14 = vpack.c.bf16 %v50_v11, %v48_v10  ;;  %v52_v16 = vld [vmem:[#allocation2 + $0x40] sm:$0xff] }
  0x2a   :  { %326 = vmatpush1.bf16.msra.mxu0 %v325_v8  ;;  %v331_v15 = vpack.c.bf16 %v55_v13, %v53_v12  ;;  %v54_v17 = vld [vmem:[#allocation2 + $0x50] sm:$0xff]  ;;  %v57_v18 = vld [vmem:[#allocation2 + $0x68] sm:$0xff]  ;;  %v59_v19 = vld [vmem:[#allocation2 + $0x78] sm:$0xff] }
  0x2b   :  { %328 = vmatprep.subr.bf16.mxu0 %v327_v9  ;;  %v333_v20 = vpack.c.bf16 %v54_v17, %v52_v16  ;;  %v335_v21 = vpack.c.bf16 %v59_v19, %v57_v18  ;;  %v56_v22 = vld [vmem:[#allocation2 + $0x60] sm:$0xff]  ;;  %v58_v23 = vld [vmem:[#allocation2 + $0x70] sm:$0xff]  ;;  %v61_v24 = vld [vmem:[#allocation2 + $0x88] sm:$0xff] }
  0x2c   :  { %v63_v25 = vld [vmem:[#allocation2 + $0x98] sm:$0xff]  ;;  %v337_v26 = vpack.c.bf16 %v58_v23, %v56_v22  ;;  %v60_v28 = vld [vmem:[#allocation2 + $0x80] sm:$0xff]  ;;  %v62_v29 = vld [vmem:[#allocation2 + $0x90] sm:$0xff] }
  0x2d   :  { %v339_v27 = vpack.c.bf16 %v63_v25, %v61_v24  ;;  %v65_v30 = vld [vmem:[#allocation2 + $0xa8] sm:$0xff]  ;;  %v67_v31 = vld [vmem:[#allocation2 + $0xb8] sm:$0xff]  ;;  %v341_v32 = vpack.c.bf16 %v62_v29, %v60_v28  ;;  %v64_v34 = vld [vmem:[#allocation2 + $0xa0] sm:$0xff] }
  0x2e   :  { %330 = vmatpush1.bf16.msra.mxu0 %v329_v14  ;;  %v343_v33 = vpack.c.bf16 %v67_v31, %v65_v30  ;;  %v66_v35 = vld [vmem:[#allocation2 + $0xb0] sm:$0xff]  ;;  %v69_v36 = vld [vmem:[#allocation2 + $0xc8] sm:$0xff]  ;;  %v71_v37 = vld [vmem:[#allocation2 + $0xd8] sm:$0xff] }
  0x2f   :  { %332 = vmatprep.subr.bf16.mxu0 %v331_v15  ;;  %v345_v38 = vpack.c.bf16 %v66_v35, %v64_v34  ;;  %v347_v39 = vpack.c.bf16 %v71_v37, %v69_v36  ;;  %v68_v40 = vld [vmem:[#allocation2 + $0xc0] sm:$0xff]  ;;  %v70_v41 = vld [vmem:[#allocation2 + $0xd0] sm:$0xff]  ;;  %v73_v42 = vld [vmem:[#allocation2 + $0xe8] sm:$0xff] }
  0x30   :  { %v75_v43 = vld [vmem:[#allocation2 + $0xf8] sm:$0xff]  ;;  %v349_v44 = vpack.c.bf16 %v70_v41, %v68_v40  ;;  %v72_v46 = vld [vmem:[#allocation2 + $0xe0] sm:$0xff]  ;;  %v74_v47 = vld [vmem:[#allocation2 + $0xf0] sm:$0xff] }
  0x31   :  { %v351_v45 = vpack.c.bf16 %v75_v43, %v73_v42  ;;  %v353_v48 = vpack.c.bf16 %v74_v47, %v72_v46  ;;  %v42_v49 = vld [vmem:[%s515_s0] sm:$0xff]  ;;  %v43_v50 = vld [vmem:[%s515_s0 + $0x8] sm:$0xff]  ;;  %v78_v54 = vld [vmem:[#allocation4 + $0x10] sm:$0xff] }
  0x32   :  { %334 = vmatpush1.bf16.msra.mxu0 %v333_v20  ;;  %v76_v51 = vld [vmem:[#allocation4] sm:$0xff]  ;;  %v77_v52 = vld [vmem:[#allocation4 + $0x8] sm:$0xff]  ;;  %v79_v55 = vld [vmem:[#allocation4 + $0x18] sm:$0xff] }
  0x33   :  { %336 = vmatprep.subr.bf16.mxu0 %v335_v21  ;;  %v355_v53 = vpack.c.bf16 %v77_v52, %v76_v51  ;;  %v359_v56 = vpack.c.bf16 %v79_v55, %v78_v54  ;;  %v80_v57 = vld [vmem:[#allocation4 + $0x20] sm:$0xff]  ;;  %v81_v58 = vld [vmem:[#allocation4 + $0x28] sm:$0xff]  ;;  %v82_v60 = vld [vmem:[#allocation4 + $0x30] sm:$0xff] }
  0x34   :  { %v363_v59 = vpack.c.bf16 %v81_v58, %v80_v57  ;;  %v83_v61 = vld [vmem:[#allocation4 + $0x38] sm:$0xff]  ;;  %v84_v63 = vld [vmem:[#allocation4 + $0x40] sm:$0xff]  ;;  %v86_v2 = vld [vmem:[#allocation4 + $0x50] sm:$0xff] }
  0x35   :  { %356 = vmatprep.subr.bf16.mxu1 %v355_v53  ;;  %v367_v62 = vpack.c.bf16 %v83_v61, %v82_v60  ;;  %v87_v3 = vld [vmem:[#allocation4 + $0x58] sm:$0xff]  ;;  %v88_v5 = vld [vmem:[#allocation4 + $0x60] sm:$0xff]  ;;  %v89_v6 = vld [vmem:[#allocation4 + $0x68] sm:$0xff] }
  0x36   :  { %338 = vmatpush1.bf16.msra.mxu0 %v337_v26  ;;  %358 = vmatpush3.bf16.msra.mxu1 %v355_v53  ;;  %v375_v4 = vpack.c.bf16 %v87_v3, %v86_v2  ;;  %v379_v7 = vpack.c.bf16 %v89_v6, %v88_v5  ;;  %v90_v8 = vld [vmem:[#allocation4 + $0x70] sm:$0xff]  ;;  %v91_v9 = vld [vmem:[#allocation4 + $0x78] sm:$0xff] }
  0x37   :  { %340 = vmatprep.subr.bf16.mxu0 %v339_v27  ;;  %360 = vmatprep.subr.bf16.mxu1 %v359_v56  ;;  %v383_v10 = vpack.c.bf16 %v91_v9, %v90_v8 }
  0x3a   :  { %342 = vmatpush1.bf16.msra.mxu0 %v341_v32  ;;  %362 = vmatpush3.bf16.msra.mxu1 %v359_v56 }
  0x3b   :  { %344 = vmatprep.subr.bf16.mxu0 %v343_v33  ;;  %364 = vmatprep.subr.bf16.mxu1 %v363_v59 }
  0x3e   :  { %346 = vmatpush1.bf16.msra.mxu0 %v345_v38  ;;  %366 = vmatpush3.bf16.msra.mxu1 %v363_v59 }
  0x3f   :  { %348 = vmatprep.subr.bf16.mxu0 %v347_v39  ;;  %368 = vmatprep.subr.bf16.mxu1 %v367_v62 }
  0x42   :  { %350 = vmatpush1.bf16.msra.mxu0 %v349_v44  ;;  %370 = vmatpush3.bf16.msra.mxu1 %v367_v62 }
  0x43   :  { %352 = vmatprep.subr.bf16.mxu0 %v351_v45 }
  0x46   :  { %354 = vmatpush1.bf16.msra.mxu0 %v353_v48 }
  0x49   :  { %157 = vmatmul.mubr.f32.vlgmr.msra.gmra.mrb[0].mxu0 %v42_v49 }
  0x4a   :  { %162 = vmatprep.mubr.f32.mxu0 %v456_v0  ;;  %v85_v0 = vld [vmem:[#allocation4 + $0x48] sm:$0xff] }
  0x4b   :  { %v371_v1 = vpack.c.bf16 %v85_v0, %v84_v63 }
  0x4d   :  { %163 = vmatmul.mubr.f32.gmra.mrb[2].mxu0 %v43_v50  ;;  %372 = vmatprep.subr.bf16.mxu1 %v371_v1 }
  0x4e   :  { %374 = vmatpush3.bf16.msra.mxu1 %v371_v1 }
  0x4f   :  { %376 = vmatprep.subr.bf16.mxu1 %v375_v4 }
  0x52   :  { %378 = vmatpush3.bf16.msra.mxu1 %v375_v4 }
  0x53   :  { %380 = vmatprep.subr.bf16.mxu1 %v379_v7 }
  0x56   :  { %382 = vmatpush3.bf16.msra.mxu1 %v379_v7 }
  0x57   :  { %384 = vmatprep.subr.bf16.mxu1 %v383_v10 }
  0x5a   :  { %386 = vmatpush3.bf16.msra.mxu1 %v383_v10 }
 0x11c   :  { %v158_v11 = vpop.f32.mrb[0].mxu0 }
 0x11d   :  { %v268_v12 = vmul.f32 -1.442695, %v158_v11  ;;  %v160_v13 = vpop.f32.mrb[1].mxu0 }
 0x11f   :  { %394 = vpow2.f32 %v268_v12 }
 0x120   :  { %v164_v14 = vpop.f32.mrb[2].mxu0 }
 0x121   :  { %v269_v15 = vmul.f32 -1.442695, %v164_v14  ;;  %v166_v16 = vpop.f32.mrb[3].mxu0 }
 0x123   :  { %396 = vpow2.f32 %v269_v15 }
 0x129   :  { %v395_v17 = vpop.eup %394 }
 0x12a   :  { %v175_v18 = vadd.f32 1.0, %v395_v17 }
 0x12c   :  { %398 = vrcp.f32 %v175_v18 }
 0x12d   :  { %v397_v19 = vpop.eup %396 }
 0x12e   :  { %v176_v20 = vadd.f32 1.0, %v397_v19 }
 0x130   :  { %400 = vrcp.f32 %v176_v20 }
 0x136   :  { %v399_v21 = vpop.eup %398 }
 0x137   :  { %v181_v22 = vmul.f32 %v399_v21, %v158_v11 }
 0x139   :  { %v183_v23 = vmul.f32 %v181_v22, %v160_v13 }
 0x13a   :  { %v401_v24 = vpop.eup %400 }
 0x13b   :  { %v182_v25 = vmul.f32 %v401_v24, %v164_v14  ;;  %320 = vmatprep.mubr.f32.mxu1 %v183_v23 }
 0x13d   :  { %v184_v26 = vmul.f32 %v182_v25, %v166_v16 }
 0x13f   :  { %321 = vmatmul.mubr.f32.vlgmr.msra.gmra.mrb[0].mxu1 %v184_v26 }
 0x212   :  { %v322_v27 = vpop.f32.mrb[0].mxu1 }
 0x213   :  { %261 = vst [vmem:[%s518_s3 + $0x8] sm:$0xff] %v322_v27  ;;  %v251_v28 = vpop.f32.mrb[1].mxu1 }
 0x214   :  { %260 = vst [vmem:[%s518_s3] sm:$0xff] %v251_v28 }
 0x215   :  { %266 = vsyncpa [#allocation3], 1 }
 0x216   :  { %267 = vsyncpa [#allocation5], 1 }

</bundles_post_ra>
